<compile_context>
chip_gen: v7x
topology: tpu7x:2x2x1
jax: 0.10.0
libtpu: 0.0.40
codegen_flags: <defaults>
</compile_context>

<pallas_src>
import jax
import jax.numpy as jnp
from jax.experimental import pallas as pl
from jax.experimental.pallas import tpu as pltpu


def duda_kernel(x_ref,                      # (2*M*B, D) rows ordered [branch, modality, batch]
                w1a_ref, w1b_ref, b1_ref,   # att_fc Linear(2D -> D) split: (D,D),(D,D),(1,D)
                w2_ref, b2_ref,             # att_fc Linear(D -> 1): (1,D) VMEM, (1,1) SMEM
                w3s_ref, w3t_ref, b3_ref,   # fc Linear(3D -> D) merged: (D,D),(D,D),(1,D)
                out_ref):                   # (B, D)
    B, D = out_ref.shape
    MB = x_ref.shape[0] // 2                # M * B rows per branch
    M = MB // B

    x = x_ref[...]                          # (2*M*B, D), compute dtype (f32 or bf16)
    src = x[:MB]                            # (M*B, D)
    trg = x[MB:]                            # (M*B, D)
    diff = trg - src

    # --- att_fc Linear(2D -> D): cat([y, diff], -1) @ W1.T + b1
    #     == y @ w1a + diff @ w1b + b1.  The diff term (+ bias) is shared by
    #     both branches and computed once; y @ w1a is one tall matmul over the
    #     [src; trg] row stack (single MXU push/drain instead of two batched
    #     einsums).
    dw = (jnp.dot(diff, w1b_ref[...], preferred_element_type=jnp.float32)
          + b1_ref[...])                                                  # (M*B, D) f32
    hx = jnp.dot(x, w1a_ref[...], preferred_element_type=jnp.float32)     # (2*M*B, D) f32

    w2 = w2_ref[...]                        # (1, D) f32
    b2 = b2_ref[0, 0]                       # scalar (SMEM)

    def branch_reduce(hx_half, y_half):
        # ReLU -> Linear(D -> 1) as lane reduce -> Sigmoid -> gate -> modality sum.
        h = jnp.maximum(hx_half + dw, 0.0)                                # (M*B, D)
        s = jnp.sum(h * w2, axis=-1, keepdims=True) + b2                  # (M*B, 1)
        att = jax.nn.sigmoid(s)
        g = att * y_half.astype(jnp.float32)                              # (M*B, D)
        # Rows are grouped [modality][batch]: modality sum = M static
        # contiguous B-row slices added together (no reshape needed).
        acc = g[0:B]
        for m in range(1, M):
            acc = acc + g[m * B:(m + 1) * B]
        return acc                                                        # (B, D) f32

    src2 = branch_reduce(hx[:MB], src)
    trg2 = branch_reduce(hx[MB:], trg)

    # --- fc Linear(3D -> D): cat((s2, t2-s2, t2), -1) @ W3.T + b3
    #     == s2 @ (W3a - W3b).T + t2 @ (W3b + W3c).T + b3   (merged offline:
    #     one fewer matmul and no t2-s2 VPU subtraction).
    wdt = w3s_ref.dtype
    out = (jnp.dot(src2.astype(wdt), w3s_ref[...], preferred_element_type=jnp.float32)
           + jnp.dot(trg2.astype(wdt), w3t_ref[...], preferred_element_type=jnp.float32)
           + b3_ref[...])
    out_ref[...] = out.astype(out_ref.dtype)


def prepare_duda_params(params, compute_dtype=jnp.float32):
    """One-time weight prep (split/transpose W1, merge+transpose W3, reshape
    biases).  Cache the result instead of redoing the .T slices every call."""
    D = params["b1"].shape[0]
    W1, W3 = params["W1"], params["W3"]
    cdt = compute_dtype
    return {
        "w1a": W1[:, :D].T.astype(cdt),                    # (D, D)
        "w1b": W1[:, D:].T.astype(cdt),                    # (D, D)
        "b1": params["b1"].reshape(1, D).astype(jnp.float32),
        "w2": params["W2"].reshape(1, D).astype(jnp.float32),
        "b2": params["b2"].reshape(1, 1).astype(jnp.float32),
        # cat((s, t-s, t)) @ W3.T == s @ (W3a - W3b).T + t @ (W3b + W3c).T
        "w3s": (W3[:, :D] - W3[:, D:2 * D]).T.astype(cdt),      # (D, D)
        "w3t": (W3[:, D:2 * D] + W3[:, 2 * D:]).T.astype(cdt),  # (D, D)
        "b3": params["b3"].reshape(1, D).astype(jnp.float32),
    }


def duda_forward(src_experts, trg_experts, prepped, modalities):
    """Glue (stack per-modality experts into one row-major operand) + kernel call."""
    cdt = prepped["w1a"].dtype
    # Row order: [branch (src, trg)] x [modality] x [batch]  -> (2*M*B, D).
    src3 = jnp.stack([src_experts[m] for m in modalities], axis=0)   # (M, B, D)
    trg3 = jnp.stack([trg_experts[m] for m in modalities], axis=0)   # (M, B, D)
    M, B, D = src3.shape
    x_all = jnp.concatenate([src3, trg3], axis=0).reshape(2 * M * B, D).astype(cdt)

    vmem = pl.BlockSpec(memory_space=pltpu.MemorySpace.VMEM)
    smem = pl.BlockSpec(memory_space=pltpu.MemorySpace.SMEM)
    # NOTE: grid-less single invocation -- everything fits in VMEM at these
    # sizes.  At production B, add a B-parallel grid
    # (dimension_semantics=("parallel",)) with constant-index weight BlockSpecs
    # to use both v7x TensorCores; at B=2 the per-step overhead outweighs it.
    return pl.pallas_call(
        duda_kernel,
        out_shape=jax.ShapeDtypeStruct((B, D), jnp.float32),
        in_specs=[vmem,                     # x_all
                  vmem, vmem, vmem,         # w1a, w1b, b1
                  vmem, smem,               # w2, b2 (scalar -> SMEM)
                  vmem, vmem, vmem],        # w3s, w3t, b3
        out_specs=vmem,
    )(x_all,
      prepped["w1a"], prepped["w1b"], prepped["b1"],
      prepped["w2"], prepped["b2"],
      prepped["w3s"], prepped["w3t"], prepped["b3"])


def duda_ref(src_experts, trg_experts, params, modalities):
    # Pure-JAX reference mirroring the PyTorch module exactly.
    src = jnp.stack([src_experts[m] for m in modalities], axis=1)
    trg = jnp.stack([trg_experts[m] for m in modalities], axis=1)
    diff = trg - src

    def att(x):
        h = jnp.concatenate([x, diff], axis=-1) @ params["W1"].T + params["b1"]
        h = jnp.maximum(h, 0.0)
        s = h @ params["W2"].T + params["b2"]
        return jax.nn.sigmoid(s)

    src2 = (att(src) * src).sum(1)
    trg2 = (att(trg) * trg).sum(1)
    x = jnp.concatenate((src2, trg2 - src2, trg2), axis=-1)
    return x @ params["W3"].T + params["b3"]


if __name__ == "__main__":
    B = 2            # batch
    D = 32           # embed_dim
    modalities = ["video", "audio", "text"]   # M = 3

    key = jax.random.PRNGKey(0)
    keys = jax.random.split(key, 2 * len(modalities) + 6)

    src_experts = {m: jax.random.normal(keys[i], (B, D), jnp.float32)
                   for i, m in enumerate(modalities)}
    trg_experts = {m: jax.random.normal(keys[len(modalities) + i], (B, D), jnp.float32)
                   for i, m in enumerate(modalities)}

    kp = keys[2 * len(modalities):]
    params = {
        "W1": jax.random.normal(kp[0], (D, 2 * D), jnp.float32) * 0.1,
        "b1": jax.random.normal(kp[1], (D,), jnp.float32) * 0.1,
        "W2": jax.random.normal(kp[2], (1, D), jnp.float32) * 0.1,
        "b2": jax.random.normal(kp[3], (1,), jnp.float32) * 0.1,
        "W3": jax.random.normal(kp[4], (D, 3 * D), jnp.float32) * 0.1,
        "b3": jax.random.normal(kp[5], (D,), jnp.float32) * 0.1,
    }

    ref = duda_ref(src_experts, trg_experts, params, modalities)

    # f32 path: faithful to the PyTorch module semantics.
    prepped_f32 = prepare_duda_params(params, jnp.float32)
    out = jax.block_until_ready(
        duda_forward(src_experts, trg_experts, prepped_f32, modalities))
    assert out.shape == (B, D)
    assert jnp.allclose(out, ref, atol=1e-4, rtol=1e-4), "f32 kernel mismatch vs JAX reference"

    # bf16 MXU-input path (f32 accumulation) -- the recommended v5e/v6e config.
    prepped_bf16 = prepare_duda_params(params, jnp.bfloat16)
    out_bf16 = jax.block_until_ready(
        duda_forward(src_experts, trg_experts, prepped_bf16, modalities))
    assert out_bf16.shape == (B, D)
    assert jnp.allclose(out_bf16, ref, atol=1e-1, rtol=1e-1), "bf16 kernel mismatch vs JAX reference"

    print("KERNEL_OK")
</pallas_src>

<mosaic_0001>
module attributes {stable_mosaic.version = 11 : i64} {
  func.func @duda_kernel(%arg0: memref<12x32xf32, #tpu.memory_space<vmem>>, %arg1: memref<32x32xf32, #tpu.memory_space<vmem>>, %arg2: memref<32x32xf32, #tpu.memory_space<vmem>>, %arg3: memref<1x32xf32, #tpu.memory_space<vmem>>, %arg4: memref<1x32xf32, #tpu.memory_space<vmem>>, %arg5: memref<1x1xf32, #tpu.memory_space<smem>>, %arg6: memref<32x32xf32, #tpu.memory_space<vmem>>, %arg7: memref<32x32xf32, #tpu.memory_space<vmem>>, %arg8: memref<1x32xf32, #tpu.memory_space<vmem>>, %arg9: memref<2x32xf32, #tpu.memory_space<vmem>>) attributes {dimension_semantics = [], scalar_prefetch = 0 : i64, scratch_operands = 0 : i64, tpu.core_type = #tpu.core_type<tc>} {
    %c0 = arith.constant 0 : index
    %c0_0 = arith.constant 0 : index
    %0 = vector.load %arg0[%c0, %c0_0] : memref<12x32xf32, #tpu.memory_space<vmem>>, vector<12x32xf32>
    %1 = vector.extract_strided_slice %0 {offsets = [0, 0], sizes = [6, 32], strides = [1, 1]} : vector<12x32xf32> to vector<6x32xf32>
    %2 = vector.extract_strided_slice %0 {offsets = [6, 0], sizes = [6, 32], strides = [1, 1]} : vector<12x32xf32> to vector<6x32xf32>
    %3 = arith.subf %2, %1 : vector<6x32xf32>
    %c0_1 = arith.constant 0 : index
    %c0_2 = arith.constant 0 : index
    %4 = vector.load %arg2[%c0_1, %c0_2] : memref<32x32xf32, #tpu.memory_space<vmem>>, vector<32x32xf32>
    %cst = arith.constant dense<0.000000e+00> : vector<6x32xf32>
    %5 = tpu.matmul %3, %4, %cst {dimension_numbers = #tpu.dot_dimension_numbers<[1], [0], [0], [1], [0, 0, 1, 1], [], []>} : vector<6x32xf32>, vector<32x32xf32>, vector<6x32xf32> -> vector<6x32xf32>
    %c0_3 = arith.constant 0 : index
    %c0_4 = arith.constant 0 : index
    %6 = vector.load %arg3[%c0_3, %c0_4] : memref<1x32xf32, #tpu.memory_space<vmem>>, vector<1x32xf32>
    %7 = vector.broadcast %6 : vector<1x32xf32> to vector<6x32xf32>
    %8 = arith.addf %5, %7 : vector<6x32xf32>
    %c0_5 = arith.constant 0 : index
    %c0_6 = arith.constant 0 : index
    %9 = vector.load %arg1[%c0_5, %c0_6] : memref<32x32xf32, #tpu.memory_space<vmem>>, vector<32x32xf32>
    %cst_7 = arith.constant dense<0.000000e+00> : vector<12x32xf32>
    %10 = tpu.matmul %0, %9, %cst_7 {dimension_numbers = #tpu.dot_dimension_numbers<[1], [0], [0], [1], [0, 0, 1, 1], [], []>} : vector<12x32xf32>, vector<32x32xf32>, vector<12x32xf32> -> vector<12x32xf32>
    %c0_8 = arith.constant 0 : index
    %c0_9 = arith.constant 0 : index
    %11 = vector.load %arg4[%c0_8, %c0_9] : memref<1x32xf32, #tpu.memory_space<vmem>>, vector<1x32xf32>
    %c0_10 = arith.constant 0 : index
    %c0_11 = arith.constant 0 : index
    %12 = memref.load %arg5[%c0_10, %c0_11] : memref<1x1xf32, #tpu.memory_space<smem>>
    %13 = vector.extract_strided_slice %10 {offsets = [0, 0], sizes = [6, 32], strides = [1, 1]} : vector<12x32xf32> to vector<6x32xf32>
    %14 = arith.addf %13, %8 : vector<6x32xf32>
    %cst_12 = arith.constant 0.000000e+00 : f32
    %15 = vector.broadcast %cst_12 : f32 to vector<6x32xf32>
    %16 = arith.maximumf %14, %15 : vector<6x32xf32>
    %17 = vector.broadcast %11 : vector<1x32xf32> to vector<6x32xf32>
    %18 = arith.mulf %16, %17 : vector<6x32xf32>
    %cst_13 = arith.constant dense<0.000000e+00> : vector<6xf32>
    %19 = vector.multi_reduction <add>, %18, %cst_13 [1] : vector<6x32xf32> to vector<6xf32>
    %20 = vector.shape_cast %19 : vector<6xf32> to vector<6x1xf32>
    %21 = vector.broadcast %12 : f32 to vector<6x1xf32>
    %22 = arith.addf %20, %21 : vector<6x1xf32>
    %23 = arith.negf %22 : vector<6x1xf32>
    %24 = math.exp %23 : vector<6x1xf32>
    %cst_14 = arith.constant 1.000000e+00 : f32
    %25 = vector.broadcast %cst_14 : f32 to vector<6x1xf32>
    %26 = arith.addf %25, %24 : vector<6x1xf32>
    %27 = arith.divf %25, %26 : vector<6x1xf32>
    %28 = vector.broadcast %27 : vector<6x1xf32> to vector<6x32xf32>
    %29 = arith.mulf %28, %1 : vector<6x32xf32>
    %30 = vector.extract_strided_slice %29 {offsets = [0, 0], sizes = [2, 32], strides = [1, 1]} : vector<6x32xf32> to vector<2x32xf32>
    %31 = vector.extract_strided_slice %29 {offsets = [2, 0], sizes = [2, 32], strides = [1, 1]} : vector<6x32xf32> to vector<2x32xf32>
    %32 = arith.addf %30, %31 : vector<2x32xf32>
    %33 = vector.extract_strided_slice %29 {offsets = [4, 0], sizes = [2, 32], strides = [1, 1]} : vector<6x32xf32> to vector<2x32xf32>
    %34 = arith.addf %32, %33 : vector<2x32xf32>
    %35 = vector.extract_strided_slice %10 {offsets = [6, 0], sizes = [6, 32], strides = [1, 1]} : vector<12x32xf32> to vector<6x32xf32>
    %36 = arith.addf %35, %8 : vector<6x32xf32>
    %cst_15 = arith.constant 0.000000e+00 : f32
    %37 = vector.broadcast %cst_15 : f32 to vector<6x32xf32>
    %38 = arith.maximumf %36, %37 : vector<6x32xf32>
    %39 = vector.broadcast %11 : vector<1x32xf32> to vector<6x32xf32>
    %40 = arith.mulf %38, %39 : vector<6x32xf32>
    %cst_16 = arith.constant dense<0.000000e+00> : vector<6xf32>
    %41 = vector.multi_reduction <add>, %40, %cst_16 [1] : vector<6x32xf32> to vector<6xf32>
    %42 = vector.shape_cast %41 : vector<6xf32> to vector<6x1xf32>
    %43 = vector.broadcast %12 : f32 to vector<6x1xf32>
    %44 = arith.addf %42, %43 : vector<6x1xf32>
    %45 = arith.negf %44 : vector<6x1xf32>
    %46 = math.exp %45 : vector<6x1xf32>
    %cst_17 = arith.constant 1.000000e+00 : f32
    %47 = vector.broadcast %cst_17 : f32 to vector<6x1xf32>
    %48 = arith.addf %47, %46 : vector<6x1xf32>
    %49 = arith.divf %47, %48 : vector<6x1xf32>
    %50 = vector.broadcast %49 : vector<6x1xf32> to vector<6x32xf32>
    %51 = arith.mulf %50, %2 : vector<6x32xf32>
    %52 = vector.extract_strided_slice %51 {offsets = [0, 0], sizes = [2, 32], strides = [1, 1]} : vector<6x32xf32> to vector<2x32xf32>
    %53 = vector.extract_strided_slice %51 {offsets = [2, 0], sizes = [2, 32], strides = [1, 1]} : vector<6x32xf32> to vector<2x32xf32>
    %54 = arith.addf %52, %53 : vector<2x32xf32>
    %55 = vector.extract_strided_slice %51 {offsets = [4, 0], sizes = [2, 32], strides = [1, 1]} : vector<6x32xf32> to vector<2x32xf32>
    %56 = arith.addf %54, %55 : vector<2x32xf32>
    %c0_18 = arith.constant 0 : index
    %c0_19 = arith.constant 0 : index
    %57 = vector.load %arg6[%c0_18, %c0_19] : memref<32x32xf32, #tpu.memory_space<vmem>>, vector<32x32xf32>
    %cst_20 = arith.constant dense<0.000000e+00> : vector<2x32xf32>
    %58 = tpu.matmul %34, %57, %cst_20 {dimension_numbers = #tpu.dot_dimension_numbers<[1], [0], [0], [1], [0, 0, 1, 1], [], []>} : vector<2x32xf32>, vector<32x32xf32>, vector<2x32xf32> -> vector<2x32xf32>
    %c0_21 = arith.constant 0 : index
    %c0_22 = arith.constant 0 : index
    %59 = vector.load %arg7[%c0_21, %c0_22] : memref<32x32xf32, #tpu.memory_space<vmem>>, vector<32x32xf32>
    %cst_23 = arith.constant dense<0.000000e+00> : vector<2x32xf32>
    %60 = tpu.matmul %56, %59, %cst_23 {dimension_numbers = #tpu.dot_dimension_numbers<[1], [0], [0], [1], [0, 0, 1, 1], [], []>} : vector<2x32xf32>, vector<32x32xf32>, vector<2x32xf32> -> vector<2x32xf32>
    %61 = arith.addf %58, %60 : vector<2x32xf32>
    %c0_24 = arith.constant 0 : index
    %c0_25 = arith.constant 0 : index
    %62 = vector.load %arg8[%c0_24, %c0_25] : memref<1x32xf32, #tpu.memory_space<vmem>>, vector<1x32xf32>
    %63 = vector.broadcast %62 : vector<1x32xf32> to vector<2x32xf32>
    %64 = arith.addf %61, %63 : vector<2x32xf32>
    %c0_26 = arith.constant 0 : index
    %c0_27 = arith.constant 0 : index
    %65 = vector.load %arg9[%c0_26, %c0_27] : memref<2x32xf32, #tpu.memory_space<vmem>>, vector<2x32xf32>
    tpu.vector_store %arg9[%c0_26, %c0_27], %64 {strides = array<i32>} : memref<2x32xf32, #tpu.memory_space<vmem>>, vector<2x32xf32>,
    return
  }
}

</mosaic_0001>

<bundles_post_ra>
// kernel: tpu_custom_call.1
= control target key start
LH: loop header
LB: loop body
LE: loop exit
PB: predicated region body
PF: predicated region fallthrough
CT: control target
= control target key end

     0   :  { %15 = vsyncpa [#allocation4], 0  ;;  %s1001_s0 = inlined_call_operand.hbm [shape: f32[12,32], index: 0, kind: input, shape index: {}]   ;;  %s1002_s1 = inlined_call_operand.hbm [shape: f32[32,32], index: 1, kind: input, shape index: {}]   ;;  %s1003_s2 = inlined_call_operand.hbm [shape: f32[32,32], index: 2, kind: input, shape index: {}]   ;;  %s1004_s3 = inlined_call_operand.vmem [shape: f32[1,32], index: 3, kind: input, shape index: {}]   ;;  %s1005_s4 = inlined_call_operand.vmem [shape: f32[1,32], index: 4, kind: input, shape index: {}]   ;;  %s1006_s5 = inlined_call_operand.<no memory space> [shape: f32[1,1], index: 5, kind: input, shape index: {}]   ;;  %s1007_s6 = inlined_call_operand.hbm [shape: f32[32,32], index: 6, kind: input, shape index: {}]   ;;  %s1008_s7 = inlined_call_operand.hbm [shape: f32[32,32], index: 7, kind: input, shape index: {}]   ;;  %s1009_s8 = inlined_call_operand.vmem [shape: f32[1,32], index: 8, kind: input, shape index: {}]   ;;  %s1010_s9 = inlined_call_operand.hbm [shape: f32[2,32], index: 9, kind: output, shape index: {}]  }
   0x1   :  { %16 = vsyncpa [#allocation7], 0 }
   0x2   :  { %17 = vsyncpa [#allocation10], 0 }
   0x3   :  { %18 = vsyncpa [#allocation5], 0  ;;  %s801_s30 = smov [#allocation6]   ;;  %s802_s11 = smov [#allocation9]  }
   0x4   :  { %s36_s10 = sshll.u32 %s801_s30, 4  ;;  %s66_s12 = sshll.u32 %s802_s11, 4  ;;  %s37_s10 = int_to_ptr.vmem [resolvable:$true] %s36_s10  ;;  %s862_s12 = int_to_ptr.vmem [resolvable:$true] %s66_s12 }
   0x5   :  { %s661_s15 = scalar_lea.hbm %s1002_s1, 512 }
   0x6   :  { %p662_p0 = scmp.ne.s32.totalorder %s1002_s1, %s661_s15  ;;  %p665_p1 = scmp.lt.u32.totalorder %s661_s15, %s1002_s1 }
   0x8   :  { %p667_p2 = pnand %p665_p1, %p662_p0 }
   0xa   :  { %670 = shalt.err (!%p667_p2)
}
   0xb   :  { %s671_s20 = scalar_lea.vmem %s37_s10, 512  ;;  %p676_p4 = scmp.lt.s32.totalorder %s37_s10, %s37_s10 }
   0xc   :  { %p672_p3 = scmp.ne.s32.totalorder %s37_s10, %s671_s20  ;;  %p677_p5 = scmp.lt.s32.totalorder %s671_s20, %s671_s20 }
   0xe   :  { %p678_p6 = por %p677_p5, %p676_p4 }
  0x10   :  { %p679_p7 = pnand %p678_p6, %p672_p3 }
  0x12   :  { %682 = shalt.err (!%p679_p7)
}
  0x13   :  { %s803_s21 = smov 128   ;;  %s804_s22 = smov 8  }
  0x14   :  { %42 = dma.hbm_to_vmem [thread:$0]  %s1002_s1, 512, %s37_s10, [#allocation7], %s803_s21, %s803_s21, %s804_s22  }
  0x15   :  { %s683_s27 = scalar_lea.hbm %s1007_s6, 512 }
  0x16   :  { %p684_p8 = scmp.ne.s32.totalorder %s1007_s6, %s683_s27  ;;  %p687_p9 = scmp.lt.u32.totalorder %s683_s27, %s1007_s6 }
  0x18   :  { %p689_p10 = pnand %p687_p9, %p684_p8 }
  0x1a   :  { %692 = shalt.err (!%p689_p10)
}
  0x1b   :  { %s693_s13 = scalar_lea.vmem %s862_s12, 512  ;;  %p698_p12 = scmp.lt.s32.totalorder %s862_s12, %s862_s12 }
  0x1c   :  { %p694_p11 = scmp.ne.s32.totalorder %s862_s12, %s693_s13  ;;  %p699_p13 = scmp.lt.s32.totalorder %s693_s13, %s693_s13 }
  0x1e   :  { %p700_p0 = por %p699_p13, %p698_p12 }
  0x20   :  { %p701_p1 = pnand %p700_p0, %p694_p11 }
  0x22   :  { %704 = shalt.err (!%p701_p1)
}
  0x23   :  { %72 = dma.hbm_to_vmem [thread:$0]  %s1007_s6, 512, %s862_s12, [#allocation10], %s803_s21, %s803_s21, %s804_s22  }
  0x24   :  { %s805_s14 = smov [#allocation3]   ;;  %s806_s16 = smov [#allocation8]  }
  0x25   :  { %s24_s15 = sshll.u32 %s805_s14, 4  ;;  %s48_s17 = sshll.u32 %s806_s16, 4  ;;  %s25_s15 = int_to_ptr.vmem [resolvable:$true] %s24_s15  ;;  %s899_s17 = int_to_ptr.vmem [resolvable:$true] %s48_s17 }
  0x26   :  { %s705_s20 = scalar_lea.hbm %s1001_s0, 256 }
  0x27   :  { %p706_p2 = scmp.ne.s32.totalorder %s1001_s0, %s705_s20  ;;  %p709_p3 = scmp.lt.u32.totalorder %s705_s20, %s1001_s0 }
  0x29   :  { %p711_p4 = pnand %p709_p3, %p706_p2 }
  0x2b   :  { %714 = shalt.err (!%p711_p4)
}
  0x2c   :  { %s715_s6 = scalar_lea.vmem %s25_s15, 256  ;;  %p720_p6 = scmp.lt.s32.totalorder %s25_s15, %s25_s15 }
  0x2d   :  { %p716_p5 = scmp.ne.s32.totalorder %s25_s15, %s715_s6  ;;  %p721_p7 = scmp.lt.s32.totalorder %s715_s6, %s715_s6 }
  0x2f   :  { %p722_p8 = por %p721_p7, %p720_p6 }
  0x31   :  { %p723_p9 = pnand %p722_p8, %p716_p5 }
  0x33   :  { %726 = shalt.err (!%p723_p9)
}
  0x34   :  { %30 = dma.hbm_to_vmem [thread:$0]  %s1001_s0, 256, %s25_s15, [#allocation4], %s803_s21, %s803_s21, %s804_s22  }
  0x35   :  { %s727_s30 = scalar_lea.hbm %s1003_s2, 512 }
  0x36   :  { %p728_p10 = scmp.ne.s32.totalorder %s1003_s2, %s727_s30  ;;  %p731_p11 = scmp.lt.u32.totalorder %s727_s30, %s1003_s2 }
  0x38   :  { %p733_p12 = pnand %p731_p11, %p728_p10 }
  0x3a   :  { %736 = shalt.err (!%p733_p12)
}
  0x3b   :  { %s737_s14 = scalar_lea.vmem %s899_s17, 512  ;;  %p742_p0 = scmp.lt.s32.totalorder %s899_s17, %s899_s17 }
  0x3c   :  { %p738_p13 = scmp.ne.s32.totalorder %s899_s17, %s737_s14  ;;  %p743_p1 = scmp.lt.s32.totalorder %s737_s14, %s737_s14 }
  0x3e   :  { %p744_p2 = por %p743_p1, %p742_p0 }
  0x40   :  { %p745_p3 = pnand %p744_p2, %p738_p13 }
  0x42   :  { %748 = shalt.err (!%p745_p3)
}
  0x43   :  { %54 = dma.hbm_to_vmem [thread:$0]  %s1003_s2, 512, %s899_s17, [#allocation7], %s803_s21, %s803_s21, %s804_s22  }
  0x44   :  { %s807_s16 = smov [#allocation11]   ;;  %s749_s23 = scalar_lea.hbm %s1008_s7, 512 }
  0x45   :  { %s78_s18 = sshll.u32 %s807_s16, 4  ;;  %p750_p4 = scmp.ne.s32.totalorder %s1008_s7, %s749_s23  ;;  %s79_s18 = int_to_ptr.vmem [resolvable:$true] %s78_s18 }
  0x46   :  { %p753_p5 = scmp.lt.u32.totalorder %s749_s23, %s1008_s7 }
  0x48   :  { %p755_p6 = pnand %p753_p5, %p750_p4 }
  0x4a   :  { %758 = shalt.err (!%p755_p6)
}
  0x4b   :  { %s759_s12 = scalar_lea.vmem %s79_s18, 512  ;;  %p764_p8 = scmp.lt.s32.totalorder %s79_s18, %s79_s18 }
  0x4c   :  { %p760_p7 = scmp.ne.s32.totalorder %s79_s18, %s759_s12  ;;  %p765_p9 = scmp.lt.s32.totalorder %s759_s12, %s759_s12 }
  0x4e   :  { %p766_p10 = por %p765_p9, %p764_p8 }
  0x50   :  { %p767_p11 = pnand %p766_p10, %p760_p7 }
  0x52   :  { %770 = shalt.err (!%p767_p11)
}
  0x53   :  { %84 = dma.hbm_to_vmem [thread:$0]  %s1008_s7, 512, %s79_s18, [#allocation10], %s803_s21, %s803_s21, %s804_s22  }
  0x54   :  { %793 = dma.done.wait [#allocation4], 256  }
  0x55   :  { %794 = vsyncadd [#allocation4], 4294967040 }
  0x56   :  { %795 = dma.done.wait [#allocation7], 1024  }
  0x57   :  { %796 = vsyncadd [#allocation7], 4294966272 }
  0x58   :  { %797 = dma.done.wait [#allocation10], 1024  }
  0x59   :  { %798 = vsyncadd [#allocation10], 4294966272  ;;  %v808_v0 = vmov 0.0|0.0   ;;  %vm809_vm0 = vmmov 0   ;;  %v810_v1 = vmov 0.0   ;;  %v109_v2 = vld [vmem:[#allocation8] sm:$0xff]  ;;  %v298_v54 = vstv %s1006_s5 }
  0x5a   :  { %612 = vmatprep.subr.bf16.mxu0 %v808_v0  ;;  %576 = vmatprep.mubr.msk.f32.mxu0 %vm809_vm0, %v810_v1  ;;  %v110_v3 = vld [vmem:[#allocation8 + $0x8] sm:$0xff]  ;;  %v199_v4 = vld [vmem:[#allocation6] sm:$0xff]  ;;  %vm126_vm1 = vcmask 261120   ;;  %v111_v7 = vld [vmem:[#allocation8 + $0x10] sm:$0xff]  ;;  %vm122_vm2 = vcmask 1041408   ;;  %vm327_vm3 = vcmask 257024  }
  0x5b   :  { %v613_v5 = vpack.c.bf16 %v110_v3, %v109_v2  ;;  %v200_v6 = vld [vmem:[#allocation6 + $0x8] sm:$0xff]  ;;  %v112_v8 = vld [vmem:[#allocation8 + $0x18] sm:$0xff]  ;;  %v201_v10 = vld [vmem:[#allocation6 + $0x10] sm:$0xff]  ;;  %vm323_vm4 = vcmask 261126   ;;  %vm294_vm5 = vcmask 259072   ;;  %s811_s29 = smov [#allocation12]  }
  0x5c   :  { %v618_v9 = vpack.c.bf16 %v200_v6, %v199_v4  ;;  %v202_v11 = vld [vmem:[#allocation6 + $0x18] sm:$0xff]  ;;  %v953_v12 = vld [vmem:[#allocation3] sm:$0xff]  ;;  %v616_v13 = vpack.c.bf16 %v112_v8, %v111_v7  ;;  %v358_v42 = vld [vmem:[#allocation11] sm:$0xff]  ;;  %s525_s30 = sshll.u32 %s811_s29, 4  ;;  %vm517_vm6 = vcmask 254976   ;;  %s526_s30 = int_to_ptr.vmem [resolvable:$true] %s525_s30 }
  0x5d   :  { %614 = vmatpush3.bf16.msra.mxu0 %v613_v5  ;;  %v622_v14 = vpack.c.bf16 %v202_v11, %v201_v10  ;;  %v955_v15 = vld [vmem:[#allocation3 + $0x8] sm:$0xf]  ;;  %v105_v16 = vrot.slane %v953_v12, 2  ;;  %587 = vmatprep.mubr.msk.f32.mxu1 %vm126_vm1, %v953_v12  ;;  %v536_v22 = vld [vmem:[%s1004_s3] ss:$0 sm:$0xff]  ;;  %v359_v43 = vld [vmem:[#allocation11 + $0x8] sm:$0xff]  ;;  %p776_p13 = scmp.lt.s32.totalorder %s526_s30, %s526_s30 }
  0x5e   :  { %619 = vmatprep.subr.bf16.mxu1 %v618_v9  ;;  %615 = vmatprep.subr.bf16.mxu0 %v808_v0  ;;  %v540_v35 = vld [vmem:[%s1005_s4] ss:$0 sm:$0xff]  ;;  %v627_v44 = vpack.c.bf16 %v359_v43, %v358_v42  ;;  %v354_v45 = vld [vmem:[#allocation9] sm:$0xff]  ;;  %v355_v46 = vld [vmem:[#allocation9 + $0x8] sm:$0xff]  ;;  %s771_s11 = scalar_lea.vmem %s526_s30, 32 }
  0x5f   :  { %621 = vmatpush3.bf16.msra.mxu1 %v618_v9  ;;  %v107_v17 = vsub.f32 %v953_v12, %v105_v16  ;;  %v108_v18 = vsub.f32 %v955_v15, %v105_v16  ;;  %v633_v47 = vpack.c.bf16 %v355_v46, %v354_v45  ;;  %v360_v48 = vld [vmem:[#allocation11 + $0x10] sm:$0xff]  ;;  %v361_v49 = vld [vmem:[#allocation11 + $0x18] sm:$0xff]  ;;  %p772_p12 = scmp.ne.s32.totalorder %s526_s30, %s771_s11  ;;  %p777_p0 = scmp.lt.s32.totalorder %s771_s11, %s771_s11 }
  0x60   :  { %623 = vmatprep.subr.bf16.mxu1 %v622_v14  ;;  %v356_v50 = vld [vmem:[#allocation9 + $0x10] sm:$0xff]  ;;  %v630_v51 = vpack.c.bf16 %v361_v49, %v360_v48  ;;  %v357_v52 = vld [vmem:[#allocation9 + $0x18] sm:$0xff] }
  0x61   :  { %617 = vmatpush3.bf16.msra.mxu0 %v616_v13  ;;  %v123_v19 = vrot.slane %v107_v17, 6  ;;  %v124_v20 = vrot.slane %v108_v18, 6  ;;  %v636_v53 = vpack.c.bf16 %v357_v52, %v356_v50  ;;  %p778_p1 = por %p777_p0, %p776_p13 }
  0x62   :  { %626 = vmatprep.subr.bf16.mxu0 %v808_v0 }
  0x63   :  { %625 = vmatpush3.bf16.msra.mxu1 %v622_v14  ;;  %v125_v21 = vsel %vm122_vm2, %v123_v19, %v124_v20  ;;  %p779_p2 = pnand %p778_p1, %p772_p12 }
  0x64   :  { %577 = vmatmul.mubr.msk.f32.vlgmr.msra.gmra.mrb[0].mxu0 %vm126_vm1, %v125_v21  ;;  %632 = vmatprep.subr.bf16.mxu1 %v808_v0 }
  0x65   :  { %598 = vmatprep.mubr.msk.f32.mxu0 %vm809_vm0, %v810_v1  ;;  %628 = vmatpush3.bf16.msra.mxu0 %v627_v44 }
  0x66   :  { %588 = vmatmul.mubr.msk.f32.vlgmr.msra.gmra.mrb[0].mxu1 %vm126_vm1, %v955_v15  ;;  %629 = vmatprep.subr.bf16.mxu0 %v808_v0 }
  0x67   :  { %609 = vmatprep.mubr.msk.f32.mxu1 %vm809_vm0, %v810_v1  ;;  %634 = vmatpush3.bf16.msra.mxu1 %v633_v47 }
  0x68   :  { %635 = vmatprep.subr.bf16.mxu1 %v808_v0 }
  0x69   :  { %631 = vmatpush3.bf16.msra.mxu0 %v630_v51 }
  0x6b   :  { %637 = vmatpush3.bf16.msra.mxu1 %v636_v53 }
 0x137   :  { %v195_v23 = vpop.f32.mrb[0].mxu0 }
 0x138   :  { %v196_v24 = vadd.f32 %v536_v22, %v195_v23  ;;  %v578_v25 = vpop.f32.mrb[1].mxu0 }
 0x139   :  { %v589_v26 = vpop.f32.mrb[0].mxu1  ;;  %v546_v25 = vld [vmem:[%s1009_s8] ss:$0 sm:$0xff] }
 0x13a   :  { %v315_v27 = vrot.slane %v196_v24, 2  ;;  %v274_v28 = vpop.f32.mrb[1].mxu1 }
 0x13b   :  { %v285_v29 = vadd.f32 %v274_v28, %v196_v24 }
 0x13c   :  { %v318_v30 = vadd.f32 %v589_v26, %v315_v27  ;;  %v317_v31 = vadd.f32 %v315_v27, %v274_v28 }
 0x13d   :  { %v286_v33 = vmax.f32 %v285_v29, 0.0 }
 0x13e   :  { %v320_v32 = vmax.f32 %v318_v30, 0.0  ;;  %v319_v34 = vmax.f32 %v317_v31, 0.0 }
 0x13f   :  { %v293_v40 = vmul.f32 %v540_v35, %v286_v33 }
 0x140   :  { %v322_v36 = vmul.f32 %v540_v35, %v320_v32  ;;  %v321_v37 = vmul.f32 %v540_v35, %v319_v34 }
 0x141   :  { %v295_v41 = vsel %vm294_vm5, %v293_v40, 0.0 }
 0x142   :  { %v328_v38 = vsel %vm327_vm3, %v322_v36, 0.0  ;;  %v324_v39 = vsel %vm323_vm4, %v321_v37, 0.0 }
 0x143   :  { %329 = vadd.xlane.f32.xlu0 %v328_v38  ;;  %325 = vadd.xlane.f32.xlu1 %v324_v39 }
 0x147   :  { %296 = vadd.xlane.f32.xlu0 %v295_v41 }
 0x1d0   :  { %v330_v55 = vpop.xlane.xlu0 %329  ;;  %v326_v56 = vpop.xlane.xlu1 %325 }
 0x1d1   :  { %v332_v57 = vadd.f32 %v330_v55, %v298_v54  ;;  %v331_v58 = vadd.f32 %v326_v56, %v298_v54 }
 0x1d3   :  { %v543_v59 = vmul.f32 -1.442695, %v332_v57  ;;  %v542_v60 = vmul.f32 -1.442695, %v331_v58 }
 0x1d4   :  { %v297_v61 = vpop.xlane.xlu0 %296 }
 0x1d5   :  { %649 = vpow2.f32 %v543_v59  ;;  %v299_v62 = vadd.f32 %v298_v54, %v297_v61 }
 0x1d6   :  { %651 = vpow2.f32 %v542_v60 }
 0x1d7   :  { %v541_v63 = vmul.f32 -1.442695, %v299_v62 }
 0x1d9   :  { %653 = vpow2.f32 %v541_v63 }
 0x1df   :  { %v650_v1 = vpop.eup %649 }
 0x1e0   :  { %v652_v0 = vpop.eup %651  ;;  %v340_v2 = vadd.f32 1.0, %v650_v1 }
 0x1e1   :  { %v339_v3 = vadd.f32 1.0, %v652_v0 }
 0x1e2   :  { %655 = vrcp.f32 %v340_v2 }
 0x1e3   :  { %v654_v4 = vpop.eup %653  ;;  %657 = vrcp.f32 %v339_v3 }
 0x1e4   :  { %v303_v5 = vadd.f32 1.0, %v654_v4 }
 0x1e6   :  { %659 = vrcp.f32 %v303_v5 }
 0x1ec   :  { %v656_v6 = vpop.eup %655 }
 0x1ed   :  { %v658_v7 = vpop.eup %657  ;;  %v346_v8 = vmul.f32 %v656_v6, %v955_v15 }
 0x1ee   :  { %v345_v9 = vmul.f32 %v658_v7, %v953_v12 }
 0x1ef   :  { %v348_v10 = vrot.slane %v346_v8, 2  ;;  %v351_v16 = vrot.slane %v346_v8, 4 }
 0x1f0   :  { %v660_v11 = vpop.eup %659 }
 0x1f1   :  { %v306_v13 = vmul.f32 %v660_v11, %v953_v12  ;;  %v350_v14 = vadd.f32 %v348_v10, %v345_v9 }
 0x1f3   :  { %v353_v17 = vadd.f32 %v351_v16, %v350_v14  ;;  %v308_v18 = vrot.slane %v306_v13, 2  ;;  %v311_v21 = vrot.slane %v306_v13, 4 }
 0x1f5   :  { %v363_v19 = vrot.slane %v353_v17, 6  ;;  %v310_v20 = vadd.f32 %v308_v18, %v306_v13 }
 0x1f7   :  { %599 = vmatmul.mubr.msk.f32.vlgmr.msra.gmra.mrb[2].mxu0 %vm126_vm1, %v363_v19  ;;  %v313_v22 = vadd.f32 %v311_v21, %v310_v20 }
 0x1f9   :  { %610 = vmatmul.mubr.msk.f32.vlgmr.msra.gmra.mrb[2].mxu1 %vm126_vm1, %v313_v22 }
 0x2ca   :  { %v432_v23 = vpop.f32.mrb[2].mxu0 }
 0x2cb   :  { %v600_v15 = vpop.f32.mrb[3].mxu0 }
 0x2cc   :  { %v505_v24 = vpop.f32.mrb[2].mxu1 }
 0x2cd   :  { %v506_v12 = vadd.f32 %v505_v24, %v432_v23  ;;  %v611_v26 = vpop.f32.mrb[3].mxu1 }
 0x2cf   :  { %v516_v27 = vadd.f32 %v546_v25, %v506_v12 }
 0x2d1   :  { %518 = vst.msk [vmem:[#allocation12] sm:$0x3] %vm517_vm6, %v516_v27 }
 0x2d2   :  { %782 = shalt.err (!%p779_p2)
}
 0x2d3   :  { %s783_s10 = scalar_lea.hbm %s1010_s9, 32 }
 0x2d4   :  { %p784_p3 = scmp.ne.s32.totalorder %s1010_s9, %s783_s10  ;;  %p787_p4 = scmp.lt.u32.totalorder %s783_s10, %s1010_s9 }
 0x2d6   :  { %p789_p5 = pnand %p787_p4, %p784_p3 }
 0x2d8   :  { %792 = shalt.err (!%p789_p5)
}
 0x2d9   :  { %528 = dma.vmem_to_hbm [thread:$0]  %s526_s30, 32, %s1010_s9, [#allocation5]  }
 0x2da   :  { %799 = dma.done.wait [#allocation5], 32  }
 0x2db   :  { %800 = vsyncadd [#allocation5], 4294967264 }
 0x2dc   :  { %532 = vsyncpa [#allocation4], 1 }
 0x2dd   :  { %533 = vsyncpa [#allocation7], 1 }
 0x2de   :  { %534 = vsyncpa [#allocation10], 1 }
 0x2df   :  { %535 = vsyncpa [#allocation5], 1 }

</bundles_post_ra>
